<compile_context>
chip_gen: v7x
topology: tpu7x:2x2x1
jax: 0.10.0
libtpu: 0.0.40
codegen_flags: <defaults>
</compile_context>

<pallas_src>
import functools

import jax
import jax.numpy as jnp
from jax.experimental import pallas as pl
from jax.experimental.pallas import tpu as pltpu


# ----------------------------------------------------------------------------
# Fused TemporalBlock kernel
# ----------------------------------------------------------------------------
def _dilated_conv_taps(x_bf16, w_ref, *, k_size, dilation, out_len):
    """Valid dilated conv as K per-tap MXU matmuls, f32 accumulation.

    x_bf16: (C_in, L_in) bf16 value.   w_ref: (K, C_out, C_in) bf16 ref.
    Returns (C_out, out_len) f32, out[:, p] = sum_k w[k] @ x[:, p + k*dilation].
    """
    c_out = w_ref.shape[1]
    acc = jnp.zeros((c_out, out_len), jnp.float32)
    for k in range(k_size):                                  # K is small & static
        start = k * dilation
        acc = acc + jnp.dot(w_ref[k], x_bf16[:, start:start + out_len],
                            preferred_element_type=jnp.float32)
    return acc


def _temporal_block_kernel(*args, k_size, dilation, l_out, pad, has_downsample,
                           fuse_mean_proj, inv_len):
    """One whole TemporalBlock (optionally + mean-pool + projection) per batch row.

    Ref layout (positional):
      x_ref   (1, C_in, L + 2*pad)   block input, left-padded with 2*pad zeros
      w1_ref  (K, C_out, C_in) bf16    b1_ref (C_out, 1) f32
      w2_ref  (K, C_out, C_out) bf16   b2_ref (C_out, 1) f32
      [wds_ref (C_out, C_in) bf16, bds_ref (C_out, 1) f32]   if has_downsample
      [wp_ref  (C_out, E) f32,     bp_ref  (1, E) f32]        if fuse_mean_proj
      o_ref   (1, C_out, L)  or  (1, 1, E) if fuse_mean_proj
    """
    it = iter(args)
    x_ref = next(it)
    w1_ref = next(it); b1_ref = next(it)
    w2_ref = next(it); b2_ref = next(it)
    wds_ref = bds_ref = wp_ref = bp_ref = None
    if has_downsample:
        wds_ref = next(it); bds_ref = next(it)
    if fuse_mean_proj:
        wp_ref = next(it); bp_ref = next(it)
    o_ref = next(it)

    x_full = x_ref[0]                                # (C_in, L + 2*pad) f32
    x_bf = x_full.astype(jnp.bfloat16)               # bf16 operand for MXU

    # --- conv1 (+chomp) + bias + ReLU, computed on the extended domain so that
    #     h1 already carries its causal left-halo of `pad` zeros in VMEM. ------
    l_ext = l_out + pad
    v1 = _dilated_conv_taps(x_bf, w1_ref, k_size=k_size, dilation=dilation,
                            out_len=l_ext)           # (C_out, L + pad) f32
    h1 = jnp.maximum(v1 + b1_ref[...], 0.0)
    if pad > 0:
        # Positions p < pad correspond to the zero-padding of h1 in the reference
        # (Chomp1d output padded before conv2): force exactly zero there.
        col = jax.lax.broadcasted_iota(jnp.int32, (1, l_ext), 1)
        h1 = jnp.where(col >= pad, h1, 0.0)
    h1_bf = h1.astype(jnp.bfloat16)

    # --- conv2 (+chomp) + bias + ReLU --------------------------------------
    v2 = _dilated_conv_taps(h1_bf, w2_ref, k_size=k_size, dilation=dilation,
                            out_len=l_out)           # (C_out, L) f32
    h2 = jnp.maximum(v2 + b2_ref[...], 0.0)

    # --- residual (identity or fused 1x1 downsample conv) ------------------
    if has_downsample:
        res = jnp.dot(wds_ref[...], x_bf[:, 2 * pad:],
                      preferred_element_type=jnp.float32) + bds_ref[...]
    else:
        res = x_full[:, 2 * pad:]                    # exact f32 identity path

    out = jnp.maximum(h2 + res, 0.0)                 # (C_out, L) f32

    if fuse_mean_proj:
        # mean over time + Linear projection, all in f32, never touching HBM.
        mean = jnp.sum(out, axis=1, keepdims=True) * inv_len      # (C_out, 1)
        emb = jnp.sum(mean * wp_ref[...], axis=0, keepdims=True)  # (1, E)
        o_ref[0] = (emb + bp_ref[...]).astype(o_ref.dtype)
    else:
        o_ref[0] = out.astype(o_ref.dtype)


# ----------------------------------------------------------------------------
# Wrapper (pallas_call plumbing)
# ----------------------------------------------------------------------------
def temporal_block(x, w1, b1, w2, b2, w_ds, b_ds, *, dilation,
                   w_proj=None, b_proj=None):
    """x: (N, C_in, L).  Weights in PyTorch layout: w* (C_out, C_in, K),
    w_ds (C_out, C_in, 1) or None, w_proj (E, C_out) or None."""
    n, c_in, l = x.shape
    c_out, _, k_size = w1.shape
    pad = (k_size - 1) * dilation
    # Single causal halo pad per block (2*pad so conv2's halo of h1 can be
    # produced in-kernel from forward slices only).
    x_p = jnp.pad(x, ((0, 0), (0, 0), (2 * pad, 0)))
    lp = l + 2 * pad

    # Weight prep: tap-major layout, bf16 operands for the MXU, f32 biases.
    w1_k = jnp.transpose(w1, (2, 0, 1)).astype(jnp.bfloat16)   # (K, C_out, C_in)
    w2_k = jnp.transpose(w2, (2, 0, 1)).astype(jnp.bfloat16)   # (K, C_out, C_out)
    b1_k = b1.reshape(c_out, 1).astype(jnp.float32)
    b2_k = b2.reshape(c_out, 1).astype(jnp.float32)

    has_ds = w_ds is not None
    fuse_proj = w_proj is not None

    inputs = [x_p, w1_k, b1_k, w2_k, b2_k]
    in_specs = [
        pl.BlockSpec((1, c_in, lp), lambda i: (i, 0, 0)),
        pl.BlockSpec((k_size, c_out, c_in), lambda i: (0, 0, 0)),
        pl.BlockSpec((c_out, 1), lambda i: (0, 0)),
        pl.BlockSpec((k_size, c_out, c_out), lambda i: (0, 0, 0)),
        pl.BlockSpec((c_out, 1), lambda i: (0, 0)),
    ]
    if has_ds:
        inputs += [w_ds[:, :, 0].astype(jnp.bfloat16),
                   b_ds.reshape(c_out, 1).astype(jnp.float32)]
        in_specs += [pl.BlockSpec((c_out, c_in), lambda i: (0, 0)),
                     pl.BlockSpec((c_out, 1), lambda i: (0, 0))]
    if fuse_proj:
        e = w_proj.shape[0]
        inputs += [w_proj.T.astype(jnp.float32),            # (C_out, E)
                   b_proj.reshape(1, e).astype(jnp.float32)]
        in_specs += [pl.BlockSpec((c_out, e), lambda i: (0, 0)),
                     pl.BlockSpec((1, e), lambda i: (0, 0))]
        out_shape = jax.ShapeDtypeStruct((n, 1, e), x.dtype)
        out_spec = pl.BlockSpec((1, 1, e), lambda i: (i, 0, 0))
    else:
        out_shape = jax.ShapeDtypeStruct((n, c_out, l), x.dtype)
        out_spec = pl.BlockSpec((1, c_out, l), lambda i: (i, 0, 0))

    kernel = functools.partial(
        _temporal_block_kernel, k_size=k_size, dilation=dilation, l_out=l,
        pad=pad, has_downsample=has_ds, fuse_mean_proj=fuse_proj,
        inv_len=1.0 / l)

    out = pl.pallas_call(
        kernel,
        out_shape=out_shape,
        grid_spec=pltpu.PrefetchScalarGridSpec(
            num_scalar_prefetch=0,
            grid=(n,),
            in_specs=in_specs,
            out_specs=out_spec,
        ),
        compiler_params=pltpu.CompilerParams(
            dimension_semantics=("parallel",)),   # shard batch across TCs (v7x)
    )(*inputs)

    if fuse_proj:
        out = out.reshape(n, w_proj.shape[0])
    return out


# ----------------------------------------------------------------------------
# TCNEncoder forward (eval mode: dropout = identity)
# ----------------------------------------------------------------------------
@jax.jit
def tcn_encoder_forward(x, params):
    feat = x
    n_blocks = len(params["blocks"])
    for i, blk in enumerate(params["blocks"]):
        last = i == n_blocks - 1
        feat = temporal_block(
            feat, blk["w1"], blk["b1"], blk["w2"], blk["b2"],
            blk["w_ds"], blk["b_ds"], dilation=2 ** i,
            w_proj=params["w_proj"] if last else None,
            b_proj=params["b_proj"] if last else None)
    return feat


def init_params(key, input_size, num_channels, kernel_size, emb_dim,
                dtype=jnp.float32):
    params = {"blocks": []}
    in_ch = input_size
    for out_ch in num_channels:
        key, k1, k2, k3, k4, k5, k6 = jax.random.split(key, 7)
        blk = {
            "w1": 0.1 * jax.random.normal(k1, (out_ch, in_ch, kernel_size), dtype),
            "b1": 0.1 * jax.random.normal(k2, (out_ch,), dtype),
            "w2": 0.1 * jax.random.normal(k3, (out_ch, out_ch, kernel_size), dtype),
            "b2": 0.1 * jax.random.normal(k4, (out_ch,), dtype),
        }
        if in_ch != out_ch:
            blk["w_ds"] = 0.1 * jax.random.normal(k5, (out_ch, in_ch, 1), dtype)
            blk["b_ds"] = 0.1 * jax.random.normal(k6, (out_ch,), dtype)
        else:
            blk["w_ds"] = None
            blk["b_ds"] = None
        params["blocks"].append(blk)
        in_ch = out_ch
    key, kp, kb = jax.random.split(key, 3)
    params["w_proj"] = 0.1 * jax.random.normal(kp, (emb_dim, in_ch), dtype)
    params["b_proj"] = 0.1 * jax.random.normal(kb, (emb_dim,), dtype)
    return params


# ----------------------------------------------------------------------------
# Pure-JAX reference (mirrors the PyTorch module in eval mode).
# Default precision (bf16 MXU) — the kernel uses bf16-with-f32-acc matmuls, so
# the old 1e-4 HIGHEST-precision tolerance no longer applies (expected).
# ----------------------------------------------------------------------------
def _ref_conv(x, w, b, dilation, padding):
    out = jax.lax.conv_general_dilated(
        x, w, window_strides=(1,), padding=[(padding, padding)],
        rhs_dilation=(dilation,), dimension_numbers=("NCH", "OIH", "NCH"))
    out = out + b[None, :, None]
    if padding > 0:
        out = out[..., :-padding]          # Chomp1d
    return out


def ref_forward(x, params, *, kernel_size):
    feat = x
    for i, blk in enumerate(params["blocks"]):
        d = 2 ** i
        p = (kernel_size - 1) * d
        h = jax.nn.relu(_ref_conv(feat, blk["w1"], blk["b1"], d, p))
        h = jax.nn.relu(_ref_conv(h, blk["w2"], blk["b2"], d, p))
        res = feat if blk["w_ds"] is None else _ref_conv(
            feat, blk["w_ds"], blk["b_ds"], 1, 0)
        feat = jax.nn.relu(h + res)
    m = jnp.mean(feat, axis=2)
    return jnp.dot(m, params["w_proj"].T) + params["b_proj"]


if __name__ == "__main__":
    key = jax.random.PRNGKey(0)

    # Small shapes consistent with TCNEncoder: x is (batch, input_size, seq_len)
    N, INPUT_SIZE, L = 2, 4, 16
    NUM_CHANNELS = [8, 8]      # block0: 4->8 (fused downsample), block1: 8->8 (identity res)
    KERNEL_SIZE = 3
    EMB_DIM = 32

    key, kx, kp = jax.random.split(key, 3)
    x = jax.random.normal(kx, (N, INPUT_SIZE, L), dtype=jnp.float32)
    params = init_params(kp, INPUT_SIZE, NUM_CHANNELS, KERNEL_SIZE, EMB_DIM)

    emb = tcn_encoder_forward(x, params)
    jax.block_until_ready(emb)

    emb_ref = ref_forward(x, params, kernel_size=KERNEL_SIZE)
    jax.block_until_ready(emb_ref)

    assert emb.shape == (N, EMB_DIM), emb.shape
    assert emb.dtype == x.dtype
    max_err = jnp.max(jnp.abs(emb - emb_ref))
    assert jnp.allclose(emb, emb_ref, atol=1e-2, rtol=1e-2), (
        f"mismatch vs pure-JAX reference: max abs err = {max_err}")

    print("KERNEL_OK")
</pallas_src>

<mosaic_0001>
module attributes {stable_mosaic.version = 11 : i64} {
  func.func @_temporal_block_kernel(%arg0: i32, %arg1: memref<1x4x20xf32, #tpu.memory_space<vmem>>, %arg2: memref<3x8x4xbf16, #tpu.memory_space<vmem>>, %arg3: memref<8x1xf32, #tpu.memory_space<vmem>>, %arg4: memref<3x8x8xbf16, #tpu.memory_space<vmem>>, %arg5: memref<8x1xf32, #tpu.memory_space<vmem>>, %arg6: memref<8x4xbf16, #tpu.memory_space<vmem>>, %arg7: memref<8x1xf32, #tpu.memory_space<vmem>>, %arg8: memref<1x8x16xf32, #tpu.memory_space<vmem>>) attributes {dimension_semantics = [#tpu.dimension_semantics<parallel>], iteration_bounds = array<i64: 2>, scalar_prefetch = 0 : i64, scratch_operands = 0 : i64, tpu.core_type = #tpu.core_type<tc>, window_params = [{transform_indices = @transform_0, window_bounds = array<i64: 1, 4, 20>}, {pipeline_mode = #tpu.pipeline_mode<synchronous>, transform_indices = @transform_1, window_bounds = array<i64: 3, 8, 4>}, {pipeline_mode = #tpu.pipeline_mode<synchronous>, transform_indices = @transform_2, window_bounds = array<i64: 8, 1>}, {pipeline_mode = #tpu.pipeline_mode<synchronous>, transform_indices = @transform_3, window_bounds = array<i64: 3, 8, 8>}, {pipeline_mode = #tpu.pipeline_mode<synchronous>, transform_indices = @transform_4, window_bounds = array<i64: 8, 1>}, {pipeline_mode = #tpu.pipeline_mode<synchronous>, transform_indices = @transform_5, window_bounds = array<i64: 8, 4>}, {pipeline_mode = #tpu.pipeline_mode<synchronous>, transform_indices = @transform_6, window_bounds = array<i64: 8, 1>}, {transform_indices = @transform_7, window_bounds = array<i64: 1, 8, 16>}]} {
    %c0 = arith.constant 0 : index
    %c0_0 = arith.constant 0 : index
    %c0_1 = arith.constant 0 : index
    %0 = vector.load %arg1[%c0, %c0_0, %c0_1] : memref<1x4x20xf32, #tpu.memory_space<vmem>>, vector<1x4x20xf32>
    %1 = vector.shape_cast %0 : vector<1x4x20xf32> to vector<4x20xf32>
    %2 = arith.truncf %1 : vector<4x20xf32> to vector<4x20xbf16>
    %cst = arith.constant 0.000000e+00 : f32
    %3 = vector.broadcast %cst : f32 to vector<8x18xf32>
    %c0_2 = arith.constant 0 : index
    %c0_3 = arith.constant 0 : index
    %c0_4 = arith.constant 0 : index
    %4 = vector.load %arg2[%c0_2, %c0_3, %c0_4] : memref<3x8x4xbf16, #tpu.memory_space<vmem>>, vector<1x8x4xbf16>
    %5 = vector.shape_cast %4 : vector<1x8x4xbf16> to vector<8x4xbf16>
    %6 = vector.extract_strided_slice %2 {offsets = [0, 0], sizes = [4, 18], strides = [1, 1]} : vector<4x20xbf16> to vector<4x18xbf16>
    %cst_5 = arith.constant dense<0.000000e+00> : vector<8x18xf32>
    %7 = tpu.matmul %5, %6, %cst_5 {dimension_numbers = #tpu.dot_dimension_numbers<[1], [0], [0], [1], [0, 0, 1, 1], [], []>} : vector<8x4xbf16>, vector<4x18xbf16>, vector<8x18xf32> -> vector<8x18xf32>
    %8 = arith.addf %3, %7 : vector<8x18xf32>
    %c1 = arith.constant 1 : index
    %c0_6 = arith.constant 0 : index
    %c0_7 = arith.constant 0 : index
    %9 = vector.load %arg2[%c1, %c0_6, %c0_7] : memref<3x8x4xbf16, #tpu.memory_space<vmem>>, vector<1x8x4xbf16>
    %10 = vector.shape_cast %9 : vector<1x8x4xbf16> to vector<8x4xbf16>
    %11 = vector.extract_strided_slice %2 {offsets = [0, 1], sizes = [4, 18], strides = [1, 1]} : vector<4x20xbf16> to vector<4x18xbf16>
    %cst_8 = arith.constant dense<0.000000e+00> : vector<8x18xf32>
    %12 = tpu.matmul %10, %11, %cst_8 {dimension_numbers = #tpu.dot_dimension_numbers<[1], [0], [0], [1], [0, 0, 1, 1], [], []>} : vector<8x4xbf16>, vector<4x18xbf16>, vector<8x18xf32> -> vector<8x18xf32>
    %13 = arith.addf %8, %12 : vector<8x18xf32>
    %c2 = arith.constant 2 : index
    %c0_9 = arith.constant 0 : index
    %c0_10 = arith.constant 0 : index
    %14 = vector.load %arg2[%c2, %c0_9, %c0_10] : memref<3x8x4xbf16, #tpu.memory_space<vmem>>, vector<1x8x4xbf16>
    %15 = vector.shape_cast %14 : vector<1x8x4xbf16> to vector<8x4xbf16>
    %16 = vector.extract_strided_slice %2 {offsets = [0, 2], sizes = [4, 18], strides = [1, 1]} : vector<4x20xbf16> to vector<4x18xbf16>
    %cst_11 = arith.constant dense<0.000000e+00> : vector<8x18xf32>
    %17 = tpu.matmul %15, %16, %cst_11 {dimension_numbers = #tpu.dot_dimension_numbers<[1], [0], [0], [1], [0, 0, 1, 1], [], []>} : vector<8x4xbf16>, vector<4x18xbf16>, vector<8x18xf32> -> vector<8x18xf32>
    %18 = arith.addf %13, %17 : vector<8x18xf32>
    %c0_12 = arith.constant 0 : index
    %c0_13 = arith.constant 0 : index
    %19 = vector.load %arg3[%c0_12, %c0_13] : memref<8x1xf32, #tpu.memory_space<vmem>>, vector<8x1xf32>
    %20 = vector.broadcast %19 : vector<8x1xf32> to vector<8x18xf32>
    %21 = arith.addf %18, %20 : vector<8x18xf32>
    %cst_14 = arith.constant 0.000000e+00 : f32
    %22 = vector.broadcast %cst_14 : f32 to vector<8x18xf32>
    %23 = arith.maximumf %21, %22 : vector<8x18xf32>
    %24 = tpu.iota {dimensions = array<i32: 1>} : vector<1x18xi32>
    %c2_i32 = arith.constant 2 : i32
    %25 = vector.broadcast %c2_i32 : i32 to vector<1x18xi32>
    %26 = arith.cmpi sge, %24, %25 : vector<1x18xi32>
    %cst_15 = arith.constant 0.000000e+00 : f32
    %27 = vector.shape_cast %26 : vector<1x18xi1> to vector<1x18xi1>
    %28 = vector.broadcast %27 : vector<1x18xi1> to vector<8x18xi1>
    %29 = vector.broadcast %cst_15 : f32 to vector<8x18xf32>
    %30 = arith.select %28, %23, %29 : vector<8x18xi1>, vector<8x18xf32>
    %31 = arith.truncf %30 : vector<8x18xf32> to vector<8x18xbf16>
    %cst_16 = arith.constant 0.000000e+00 : f32
    %32 = vector.broadcast %cst_16 : f32 to vector<8x16xf32>
    %c0_17 = arith.constant 0 : index
    %c0_18 = arith.constant 0 : index
    %c0_19 = arith.constant 0 : index
    %33 = vector.load %arg4[%c0_17, %c0_18, %c0_19] : memref<3x8x8xbf16, #tpu.memory_space<vmem>>, vector<1x8x8xbf16>
    %34 = vector.shape_cast %33 : vector<1x8x8xbf16> to vector<8x8xbf16>
    %35 = vector.extract_strided_slice %31 {offsets = [0, 0], sizes = [8, 16], strides = [1, 1]} : vector<8x18xbf16> to vector<8x16xbf16>
    %cst_20 = arith.constant dense<0.000000e+00> : vector<8x16xf32>
    %36 = tpu.matmul %34, %35, %cst_20 {dimension_numbers = #tpu.dot_dimension_numbers<[1], [0], [0], [1], [0, 0, 1, 1], [], []>} : vector<8x8xbf16>, vector<8x16xbf16>, vector<8x16xf32> -> vector<8x16xf32>
    %37 = arith.addf %32, %36 : vector<8x16xf32>
    %c1_21 = arith.constant 1 : index
    %c0_22 = arith.constant 0 : index
    %c0_23 = arith.constant 0 : index
    %38 = vector.load %arg4[%c1_21, %c0_22, %c0_23] : memref<3x8x8xbf16, #tpu.memory_space<vmem>>, vector<1x8x8xbf16>
    %39 = vector.shape_cast %38 : vector<1x8x8xbf16> to vector<8x8xbf16>
    %40 = vector.extract_strided_slice %31 {offsets = [0, 1], sizes = [8, 16], strides = [1, 1]} : vector<8x18xbf16> to vector<8x16xbf16>
    %cst_24 = arith.constant dense<0.000000e+00> : vector<8x16xf32>
    %41 = tpu.matmul %39, %40, %cst_24 {dimension_numbers = #tpu.dot_dimension_numbers<[1], [0], [0], [1], [0, 0, 1, 1], [], []>} : vector<8x8xbf16>, vector<8x16xbf16>, vector<8x16xf32> -> vector<8x16xf32>
    %42 = arith.addf %37, %41 : vector<8x16xf32>
    %c2_25 = arith.constant 2 : index
    %c0_26 = arith.constant 0 : index
    %c0_27 = arith.constant 0 : index
    %43 = vector.load %arg4[%c2_25, %c0_26, %c0_27] : memref<3x8x8xbf16, #tpu.memory_space<vmem>>, vector<1x8x8xbf16>
    %44 = vector.shape_cast %43 : vector<1x8x8xbf16> to vector<8x8xbf16>
    %45 = vector.extract_strided_slice %31 {offsets = [0, 2], sizes = [8, 16], strides = [1, 1]} : vector<8x18xbf16> to vector<8x16xbf16>
    %cst_28 = arith.constant dense<0.000000e+00> : vector<8x16xf32>
    %46 = tpu.matmul %44, %45, %cst_28 {dimension_numbers = #tpu.dot_dimension_numbers<[1], [0], [0], [1], [0, 0, 1, 1], [], []>} : vector<8x8xbf16>, vector<8x16xbf16>, vector<8x16xf32> -> vector<8x16xf32>
    %47 = arith.addf %42, %46 : vector<8x16xf32>
    %c0_29 = arith.constant 0 : index
    %c0_30 = arith.constant 0 : index
    %48 = vector.load %arg5[%c0_29, %c0_30] : memref<8x1xf32, #tpu.memory_space<vmem>>, vector<8x1xf32>
    %49 = vector.broadcast %48 : vector<8x1xf32> to vector<8x16xf32>
    %50 = arith.addf %47, %49 : vector<8x16xf32>
    %cst_31 = arith.constant 0.000000e+00 : f32
    %51 = vector.broadcast %cst_31 : f32 to vector<8x16xf32>
    %52 = arith.maximumf %50, %51 : vector<8x16xf32>
    %c0_32 = arith.constant 0 : index
    %c0_33 = arith.constant 0 : index
    %53 = vector.load %arg6[%c0_32, %c0_33] : memref<8x4xbf16, #tpu.memory_space<vmem>>, vector<8x4xbf16>
    %54 = vector.extract_strided_slice %2 {offsets = [0, 4], sizes = [4, 16], strides = [1, 1]} : vector<4x20xbf16> to vector<4x16xbf16>
    %cst_34 = arith.constant dense<0.000000e+00> : vector<8x16xf32>
    %55 = tpu.matmul %53, %54, %cst_34 {dimension_numbers = #tpu.dot_dimension_numbers<[1], [0], [0], [1], [0, 0, 1, 1], [], []>} : vector<8x4xbf16>, vector<4x16xbf16>, vector<8x16xf32> -> vector<8x16xf32>
    %c0_35 = arith.constant 0 : index
    %c0_36 = arith.constant 0 : index
    %56 = vector.load %arg7[%c0_35, %c0_36] : memref<8x1xf32, #tpu.memory_space<vmem>>, vector<8x1xf32>
    %57 = vector.broadcast %56 : vector<8x1xf32> to vector<8x16xf32>
    %58 = arith.addf %55, %57 : vector<8x16xf32>
    %59 = arith.addf %52, %58 : vector<8x16xf32>
    %cst_37 = arith.constant 0.000000e+00 : f32
    %60 = vector.broadcast %cst_37 : f32 to vector<8x16xf32>
    %61 = arith.maximumf %59, %60 : vector<8x16xf32>
    %c0_38 = arith.constant 0 : index
    %c0_39 = arith.constant 0 : index
    %c0_40 = arith.constant 0 : index
    %62 = vector.load %arg8[%c0_38, %c0_39, %c0_40] : memref<1x8x16xf32, #tpu.memory_space<vmem>>, vector<1x8x16xf32>
    %63 = vector.shape_cast %62 : vector<1x8x16xf32> to vector<8x16xf32>
    %64 = vector.shape_cast %61 : vector<8x16xf32> to vector<1x8x16xf32>
    tpu.vector_store %arg8[%c0_38, %c0_39, %c0_40], %64 {strides = array<i32>} : memref<1x8x16xf32, #tpu.memory_space<vmem>>, vector<1x8x16xf32>,
    return
  }
  func.func @transform_0(%arg0: i32) -> (i32, i32, i32) {
    %c0_i32 = arith.constant 0 : i32
    %c0_i32_0 = arith.constant 0 : i32
    %c0_i32_1 = arith.constant 0 : i32
    return %arg0, %c0_i32, %c0_i32_0 : i32, i32, i32
  }
  func.func @transform_1(%arg0: i32) -> (i32, i32, i32) {
    %c0_i32 = arith.constant 0 : i32
    %c0_i32_0 = arith.constant 0 : i32
    %c0_i32_1 = arith.constant 0 : i32
    %c0_i32_2 = arith.constant 0 : i32
    return %c0_i32, %c0_i32_0, %c0_i32_1 : i32, i32, i32
  }
  func.func @transform_2(%arg0: i32) -> (i32, i32) {
    %c0_i32 = arith.constant 0 : i32
    %c0_i32_0 = arith.constant 0 : i32
    %c0_i32_1 = arith.constant 0 : i32
    return %c0_i32, %c0_i32_0 : i32, i32
  }
  func.func @transform_3(%arg0: i32) -> (i32, i32, i32) {
    %c0_i32 = arith.constant 0 : i32
    %c0_i32_0 = arith.constant 0 : i32
    %c0_i32_1 = arith.constant 0 : i32
    %c0_i32_2 = arith.constant 0 : i32
    return %c0_i32, %c0_i32_0, %c0_i32_1 : i32, i32, i32
  }
  func.func @transform_4(%arg0: i32) -> (i32, i32) {
    %c0_i32 = arith.constant 0 : i32
    %c0_i32_0 = arith.constant 0 : i32
    %c0_i32_1 = arith.constant 0 : i32
    return %c0_i32, %c0_i32_0 : i32, i32
  }
  func.func @transform_5(%arg0: i32) -> (i32, i32) {
    %c0_i32 = arith.constant 0 : i32
    %c0_i32_0 = arith.constant 0 : i32
    %c0_i32_1 = arith.constant 0 : i32
    return %c0_i32, %c0_i32_0 : i32, i32
  }
  func.func @transform_6(%arg0: i32) -> (i32, i32) {
    %c0_i32 = arith.constant 0 : i32
    %c0_i32_0 = arith.constant 0 : i32
    %c0_i32_1 = arith.constant 0 : i32
    return %c0_i32, %c0_i32_0 : i32, i32
  }
  func.func @transform_7(%arg0: i32) -> (i32, i32, i32) {
    %c0_i32 = arith.constant 0 : i32
    %c0_i32_0 = arith.constant 0 : i32
    %c0_i32_1 = arith.constant 0 : i32
    return %arg0, %c0_i32, %c0_i32_0 : i32, i32, i32
  }
}

module attributes {stable_mosaic.version = 11 : i64} {
  func.func @_temporal_block_kernel(%arg0: i32, %arg1: memref<1x8x24xf32, #tpu.memory_space<vmem>>, %arg2: memref<3x8x8xbf16, #tpu.memory_space<vmem>>, %arg3: memref<8x1xf32, #tpu.memory_space<vmem>>, %arg4: memref<3x8x8xbf16, #tpu.memory_space<vmem>>, %arg5: memref<8x1xf32, #tpu.memory_space<vmem>>, %arg6: memref<8x32xf32, #tpu.memory_space<vmem>>, %arg7: memref<1x32xf32, #tpu.memory_space<vmem>>, %arg8: memref<1x1x32xf32, #tpu.memory_space<vmem>>) attributes {dimension_semantics = [#tpu.dimension_semantics<parallel>], iteration_bounds = array<i64: 2>, scalar_prefetch = 0 : i64, scratch_operands = 0 : i64, tpu.core_type = #tpu.core_type<tc>, window_params = [{transform_indices = @transform_0, window_bounds = array<i64: 1, 8, 24>}, {pipeline_mode = #tpu.pipeline_mode<synchronous>, transform_indices = @transform_1, window_bounds = array<i64: 3, 8, 8>}, {pipeline_mode = #tpu.pipeline_mode<synchronous>, transform_indices = @transform_2, window_bounds = array<i64: 8, 1>}, {pipeline_mode = #tpu.pipeline_mode<synchronous>, transform_indices = @transform_3, window_bounds = array<i64: 3, 8, 8>}, {pipeline_mode = #tpu.pipeline_mode<synchronous>, transform_indices = @transform_4, window_bounds = array<i64: 8, 1>}, {pipeline_mode = #tpu.pipeline_mode<synchronous>, transform_indices = @transform_5, window_bounds = array<i64: 8, 32>}, {pipeline_mode = #tpu.pipeline_mode<synchronous>, transform_indices = @transform_6, window_bounds = array<i64: 1, 32>}, {transform_indices = @transform_7, window_bounds = array<i64: 1, 1, 32>}]} {
    %c0 = arith.constant 0 : index
    %c0_0 = arith.constant 0 : index
    %c0_1 = arith.constant 0 : index
    %0 = vector.load %arg1[%c0, %c0_0, %c0_1] : memref<1x8x24xf32, #tpu.memory_space<vmem>>, vector<1x8x24xf32>
    %1 = vector.shape_cast %0 : vector<1x8x24xf32> to vector<8x24xf32>
    %2 = arith.truncf %1 : vector<8x24xf32> to vector<8x24xbf16>
    %cst = arith.constant 0.000000e+00 : f32
    %3 = vector.broadcast %cst : f32 to vector<8x20xf32>
    %c0_2 = arith.constant 0 : index
    %c0_3 = arith.constant 0 : index
    %c0_4 = arith.constant 0 : index
    %4 = vector.load %arg2[%c0_2, %c0_3, %c0_4] : memref<3x8x8xbf16, #tpu.memory_space<vmem>>, vector<1x8x8xbf16>
    %5 = vector.shape_cast %4 : vector<1x8x8xbf16> to vector<8x8xbf16>
    %6 = vector.extract_strided_slice %2 {offsets = [0, 0], sizes = [8, 20], strides = [1, 1]} : vector<8x24xbf16> to vector<8x20xbf16>
    %cst_5 = arith.constant dense<0.000000e+00> : vector<8x20xf32>
    %7 = tpu.matmul %5, %6, %cst_5 {dimension_numbers = #tpu.dot_dimension_numbers<[1], [0], [0], [1], [0, 0, 1, 1], [], []>} : vector<8x8xbf16>, vector<8x20xbf16>, vector<8x20xf32> -> vector<8x20xf32>
    %8 = arith.addf %3, %7 : vector<8x20xf32>
    %c1 = arith.constant 1 : index
    %c0_6 = arith.constant 0 : index
    %c0_7 = arith.constant 0 : index
    %9 = vector.load %arg2[%c1, %c0_6, %c0_7] : memref<3x8x8xbf16, #tpu.memory_space<vmem>>, vector<1x8x8xbf16>
    %10 = vector.shape_cast %9 : vector<1x8x8xbf16> to vector<8x8xbf16>
    %11 = vector.extract_strided_slice %2 {offsets = [0, 2], sizes = [8, 20], strides = [1, 1]} : vector<8x24xbf16> to vector<8x20xbf16>
    %cst_8 = arith.constant dense<0.000000e+00> : vector<8x20xf32>
    %12 = tpu.matmul %10, %11, %cst_8 {dimension_numbers = #tpu.dot_dimension_numbers<[1], [0], [0], [1], [0, 0, 1, 1], [], []>} : vector<8x8xbf16>, vector<8x20xbf16>, vector<8x20xf32> -> vector<8x20xf32>
    %13 = arith.addf %8, %12 : vector<8x20xf32>
    %c2 = arith.constant 2 : index
    %c0_9 = arith.constant 0 : index
    %c0_10 = arith.constant 0 : index
    %14 = vector.load %arg2[%c2, %c0_9, %c0_10] : memref<3x8x8xbf16, #tpu.memory_space<vmem>>, vector<1x8x8xbf16>
    %15 = vector.shape_cast %14 : vector<1x8x8xbf16> to vector<8x8xbf16>
    %16 = vector.extract_strided_slice %2 {offsets = [0, 4], sizes = [8, 20], strides = [1, 1]} : vector<8x24xbf16> to vector<8x20xbf16>
    %cst_11 = arith.constant dense<0.000000e+00> : vector<8x20xf32>
    %17 = tpu.matmul %15, %16, %cst_11 {dimension_numbers = #tpu.dot_dimension_numbers<[1], [0], [0], [1], [0, 0, 1, 1], [], []>} : vector<8x8xbf16>, vector<8x20xbf16>, vector<8x20xf32> -> vector<8x20xf32>
    %18 = arith.addf %13, %17 : vector<8x20xf32>
    %c0_12 = arith.constant 0 : index
    %c0_13 = arith.constant 0 : index
    %19 = vector.load %arg3[%c0_12, %c0_13] : memref<8x1xf32, #tpu.memory_space<vmem>>, vector<8x1xf32>
    %20 = vector.broadcast %19 : vector<8x1xf32> to vector<8x20xf32>
    %21 = arith.addf %18, %20 : vector<8x20xf32>
    %cst_14 = arith.constant 0.000000e+00 : f32
    %22 = vector.broadcast %cst_14 : f32 to vector<8x20xf32>
    %23 = arith.maximumf %21, %22 : vector<8x20xf32>
    %24 = tpu.iota {dimensions = array<i32: 1>} : vector<1x20xi32>
    %c4_i32 = arith.constant 4 : i32
    %25 = vector.broadcast %c4_i32 : i32 to vector<1x20xi32>
    %26 = arith.cmpi sge, %24, %25 : vector<1x20xi32>
    %cst_15 = arith.constant 0.000000e+00 : f32
    %27 = vector.shape_cast %26 : vector<1x20xi1> to vector<1x20xi1>
    %28 = vector.broadcast %27 : vector<1x20xi1> to vector<8x20xi1>
    %29 = vector.broadcast %cst_15 : f32 to vector<8x20xf32>
    %30 = arith.select %28, %23, %29 : vector<8x20xi1>, vector<8x20xf32>
    %31 = arith.truncf %30 : vector<8x20xf32> to vector<8x20xbf16>
    %cst_16 = arith.constant 0.000000e+00 : f32
    %32 = vector.broadcast %cst_16 : f32 to vector<8x16xf32>
    %c0_17 = arith.constant 0 : index
    %c0_18 = arith.constant 0 : index
    %c0_19 = arith.constant 0 : index
    %33 = vector.load %arg4[%c0_17, %c0_18, %c0_19] : memref<3x8x8xbf16, #tpu.memory_space<vmem>>, vector<1x8x8xbf16>
    %34 = vector.shape_cast %33 : vector<1x8x8xbf16> to vector<8x8xbf16>
    %35 = vector.extract_strided_slice %31 {offsets = [0, 0], sizes = [8, 16], strides = [1, 1]} : vector<8x20xbf16> to vector<8x16xbf16>
    %cst_20 = arith.constant dense<0.000000e+00> : vector<8x16xf32>
    %36 = tpu.matmul %34, %35, %cst_20 {dimension_numbers = #tpu.dot_dimension_numbers<[1], [0], [0], [1], [0, 0, 1, 1], [], []>} : vector<8x8xbf16>, vector<8x16xbf16>, vector<8x16xf32> -> vector<8x16xf32>
    %37 = arith.addf %32, %36 : vector<8x16xf32>
    %c1_21 = arith.constant 1 : index
    %c0_22 = arith.constant 0 : index
    %c0_23 = arith.constant 0 : index
    %38 = vector.load %arg4[%c1_21, %c0_22, %c0_23] : memref<3x8x8xbf16, #tpu.memory_space<vmem>>, vector<1x8x8xbf16>
    %39 = vector.shape_cast %38 : vector<1x8x8xbf16> to vector<8x8xbf16>
    %40 = vector.extract_strided_slice %31 {offsets = [0, 2], sizes = [8, 16], strides = [1, 1]} : vector<8x20xbf16> to vector<8x16xbf16>
    %cst_24 = arith.constant dense<0.000000e+00> : vector<8x16xf32>
    %41 = tpu.matmul %39, %40, %cst_24 {dimension_numbers = #tpu.dot_dimension_numbers<[1], [0], [0], [1], [0, 0, 1, 1], [], []>} : vector<8x8xbf16>, vector<8x16xbf16>, vector<8x16xf32> -> vector<8x16xf32>
    %42 = arith.addf %37, %41 : vector<8x16xf32>
    %c2_25 = arith.constant 2 : index
    %c0_26 = arith.constant 0 : index
    %c0_27 = arith.constant 0 : index
    %43 = vector.load %arg4[%c2_25, %c0_26, %c0_27] : memref<3x8x8xbf16, #tpu.memory_space<vmem>>, vector<1x8x8xbf16>
    %44 = vector.shape_cast %43 : vector<1x8x8xbf16> to vector<8x8xbf16>
    %45 = vector.extract_strided_slice %31 {offsets = [0, 4], sizes = [8, 16], strides = [1, 1]} : vector<8x20xbf16> to vector<8x16xbf16>
    %cst_28 = arith.constant dense<0.000000e+00> : vector<8x16xf32>
    %46 = tpu.matmul %44, %45, %cst_28 {dimension_numbers = #tpu.dot_dimension_numbers<[1], [0], [0], [1], [0, 0, 1, 1], [], []>} : vector<8x8xbf16>, vector<8x16xbf16>, vector<8x16xf32> -> vector<8x16xf32>
    %47 = arith.addf %42, %46 : vector<8x16xf32>
    %c0_29 = arith.constant 0 : index
    %c0_30 = arith.constant 0 : index
    %48 = vector.load %arg5[%c0_29, %c0_30] : memref<8x1xf32, #tpu.memory_space<vmem>>, vector<8x1xf32>
    %49 = vector.broadcast %48 : vector<8x1xf32> to vector<8x16xf32>
    %50 = arith.addf %47, %49 : vector<8x16xf32>
    %cst_31 = arith.constant 0.000000e+00 : f32
    %51 = vector.broadcast %cst_31 : f32 to vector<8x16xf32>
    %52 = arith.maximumf %50, %51 : vector<8x16xf32>
    %53 = vector.extract_strided_slice %1 {offsets = [0, 8], sizes = [8, 16], strides = [1, 1]} : vector<8x24xf32> to vector<8x16xf32>
    %54 = arith.addf %52, %53 : vector<8x16xf32>
    %cst_32 = arith.constant 0.000000e+00 : f32
    %55 = vector.broadcast %cst_32 : f32 to vector<8x16xf32>
    %56 = arith.maximumf %54, %55 : vector<8x16xf32>
    %cst_33 = arith.constant dense<0.000000e+00> : vector<8xf32>
    %57 = vector.multi_reduction <add>, %56, %cst_33 [1] : vector<8x16xf32> to vector<8xf32>
    %58 = vector.shape_cast %57 : vector<8xf32> to vector<8x1xf32>
    %cst_34 = arith.constant 6.250000e-02 : f32
    %59 = vector.broadcast %cst_34 : f32 to vector<8x1xf32>
    %60 = arith.mulf %58, %59 : vector<8x1xf32>
    %c0_35 = arith.constant 0 : index
    %c0_36 = arith.constant 0 : index
    %61 = vector.load %arg6[%c0_35, %c0_36] : memref<8x32xf32, #tpu.memory_space<vmem>>, vector<8x32xf32>
    %62 = vector.broadcast %60 : vector<8x1xf32> to vector<8x32xf32>
    %63 = arith.mulf %62, %61 : vector<8x32xf32>
    %cst_37 = arith.constant dense<0.000000e+00> : vector<32xf32>
    %64 = vector.multi_reduction <add>, %63, %cst_37 [0] : vector<8x32xf32> to vector<32xf32>
    %65 = vector.shape_cast %64 : vector<32xf32> to vector<1x32xf32>
    %c0_38 = arith.constant 0 : index
    %c0_39 = arith.constant 0 : index
    %66 = vector.load %arg7[%c0_38, %c0_39] : memref<1x32xf32, #tpu.memory_space<vmem>>, vector<1x32xf32>
    %67 = arith.addf %65, %66 : vector<1x32xf32>
    %c0_40 = arith.constant 0 : index
    %c0_41 = arith.constant 0 : index
    %c0_42 = arith.constant 0 : index
    %68 = vector.load %arg8[%c0_40, %c0_41, %c0_42] : memref<1x1x32xf32, #tpu.memory_space<vmem>>, vector<1x1x32xf32>
    %69 = vector.shape_cast %68 : vector<1x1x32xf32> to vector<1x32xf32>
    %70 = vector.shape_cast %67 : vector<1x32xf32> to vector<1x1x32xf32>
    tpu.vector_store %arg8[%c0_40, %c0_41, %c0_42], %70 {strides = array<i32>} : memref<1x1x32xf32, #tpu.memory_space<vmem>>, vector<1x1x32xf32>,
    return
  }
  func.func @transform_0(%arg0: i32) -> (i32, i32, i32) {
    %c0_i32 = arith.constant 0 : i32
    %c0_i32_0 = arith.constant 0 : i32
    %c0_i32_1 = arith.constant 0 : i32
    return %arg0, %c0_i32, %c0_i32_0 : i32, i32, i32
  }
  func.func @transform_1(%arg0: i32) -> (i32, i32, i32) {
    %c0_i32 = arith.constant 0 : i32
    %c0_i32_0 = arith.constant 0 : i32
    %c0_i32_1 = arith.constant 0 : i32
    %c0_i32_2 = arith.constant 0 : i32
    return %c0_i32, %c0_i32_0, %c0_i32_1 : i32, i32, i32
  }
  func.func @transform_2(%arg0: i32) -> (i32, i32) {
    %c0_i32 = arith.constant 0 : i32
    %c0_i32_0 = arith.constant 0 : i32
    %c0_i32_1 = arith.constant 0 : i32
    return %c0_i32, %c0_i32_0 : i32, i32
  }
  func.func @transform_3(%arg0: i32) -> (i32, i32, i32) {
    %c0_i32 = arith.constant 0 : i32
    %c0_i32_0 = arith.constant 0 : i32
    %c0_i32_1 = arith.constant 0 : i32
    %c0_i32_2 = arith.constant 0 : i32
    return %c0_i32, %c0_i32_0, %c0_i32_1 : i32, i32, i32
  }
  func.func @transform_4(%arg0: i32) -> (i32, i32) {
    %c0_i32 = arith.constant 0 : i32
    %c0_i32_0 = arith.constant 0 : i32
    %c0_i32_1 = arith.constant 0 : i32
    return %c0_i32, %c0_i32_0 : i32, i32
  }
  func.func @transform_5(%arg0: i32) -> (i32, i32) {
    %c0_i32 = arith.constant 0 : i32
    %c0_i32_0 = arith.constant 0 : i32
    %c0_i32_1 = arith.constant 0 : i32
    return %c0_i32, %c0_i32_0 : i32, i32
  }
  func.func @transform_6(%arg0: i32) -> (i32, i32) {
    %c0_i32 = arith.constant 0 : i32
    %c0_i32_0 = arith.constant 0 : i32
    %c0_i32_1 = arith.constant 0 : i32
    return %c0_i32, %c0_i32_0 : i32, i32
  }
  func.func @transform_7(%arg0: i32) -> (i32, i32, i32) {
    %c0_i32 = arith.constant 0 : i32
    %c0_i32_0 = arith.constant 0 : i32
    %c0_i32_1 = arith.constant 0 : i32
    return %arg0, %c0_i32, %c0_i32_0 : i32, i32, i32
  }
}

</mosaic_0001>

<bundles_post_ra>
// kernel: tcn_encoder_forward.2
= control target key start
LH: loop header
LB: loop body
LE: loop exit
PB: predicated region body
PF: predicated region fallthrough
CT: control target
= control target key end

     0   :  { %s860_s24 = smov 0   ;;  %s950_s0 = inlined_call_operand.vmem [shape: f32[2,4,20], index: 0, kind: input, shape index: {}]   ;;  %s951_s1 = inlined_call_operand.vmem [shape: bf16[3,8,4], index: 1, kind: input, shape index: {}]   ;;  %s952_s2 = inlined_call_operand.vmem [shape: f32[8,1], index: 2, kind: input, shape index: {}]   ;;  %s953_s3 = inlined_call_operand.vmem [shape: bf16[3,8,8], index: 3, kind: input, shape index: {}]   ;;  %s954_s4 = inlined_call_operand.vmem [shape: f32[8,1], index: 4, kind: input, shape index: {}]   ;;  %s955_s5 = inlined_call_operand.vmem [shape: bf16[8,4], index: 5, kind: input, shape index: {}]   ;;  %s956_s6 = inlined_call_operand.vmem [shape: f32[8,1], index: 6, kind: input, shape index: {}]   ;;  %s957_s7 = inlined_call_operand.vmem [shape: f32[2,8,16], index: 7, kind: output, shape index: {}]  }
   0x1 LB: > { %s714_s25 = sadd.s32 4294967295, %s812_s24   ;;  %p718_p0 = scmp.ge.s32.totalorder %s812_s24, 1  ;;  %s812_s24 = sphi %s860_s24, %s17_s24  }
   0x2   : > { %p236_p1 = scmp.lt.s32.totalorder %s812_s24, 3 }
   0x4   : > { %p237_p2 = pnand %p718_p0, %p236_p1 }
   0x5   : > { %p266_p3 = scmp.lt.s32.totalorder (!%p237_p2), %s714_s25, 1  ;;  %v814_v0 = vmov (!%p237_p2), 0.0   ;;  %vm815_vm0 = vmmov (!%p237_p2), 0   ;;  %vm287_vm1 = vcmask (!%p237_p2), 1041408   ;;  %v428_v3 = vld [vmem:[%s952_s2] sm:$0xff] (!%p237_p2)  ;;  %s816_s9 = smov (!%p237_p2), 127   ;;  %v436_v22 = vlaneseq (!%p237_p2) }
   0x6   : > { %240 = sbr.rel (%p237_p2) target bundleno = 717 (0x2cd), region = 48  ;;  %748 = vmatprep.subr.bf16.mxu0 (!%p237_p2), %v814_v0  ;;  %754 = vmatprep.subr.bf16.mxu1 (!%p237_p2), %v814_v0  ;;  %v817_v5 = vmov (!%p237_p2), 0   ;;  %vm283_vm2 = vcmask (!%p237_p2), 31744   ;;  %v277_v6 = vld [vmem:[%s951_s1] sm:$0xf] (!%p237_p2)  ;;  %s818_s12 = smov (!%p237_p2), 126  }
   0x7   : > { %750 = vmatprep.mubr.msk.bf16.mxu0 (!%p237_p2), %vm815_vm0, %v814_v0  ;;  %756 = vmatprep.mubr.msk.bf16.mxu1 (!%p237_p2), %vm815_vm0, %v814_v0  ;;  %v721_v9 = vld [vmem:[%s951_s1 + $0x4] sm:$0xf] (!%p237_p2)  ;;  %v724_v12 = vld [vmem:[%s951_s1 + $0x8] sm:$0xf] (!%p237_p2)  ;;  %v437_v24 = vand.u32 (!%p237_p2), 127, %v436_v22  ;;  %vm453_vm4 = vcmask (!%p237_p2), 1043456  }
   0x8   : > { %804 = vset.pattern.permute.xlu1 (!%p237_p2), %v817_v5  ;;  %805 = vset.pattern.permute.xlu0 (!%p237_p2), %v817_v5  ;;  %v443_v35 = vld [vmem:[%s953_s3] sm:$0xf] (!%p237_p2)  ;;  %vm449_vm5 = vcmask (!%p237_p2), 64512   ;;  %s819_s19 = smov (!%p237_p2), 124   ;;  %v726_v41 = vld [vmem:[%s953_s3 + $0x4] sm:$0xf] (!%p237_p2) }
   0x9   : > { %431 = vperm.xlu1 (!%p237_p2), %804, %v428_v3   ;;  %vm438_vm3 = vcmp.ge.s32.totalorder (!%p237_p2), %v437_v24, 2  ;;  %v603_v36 = vld [vmem:[%s956_s6] sm:$0xff] (!%p237_p2)  ;;  %v729_v46 = vld [vmem:[%s953_s3 + $0x8] sm:$0xf] (!%p237_p2)  ;;  %vm659_vm6 = vcmask (!%p237_p2), 130048  }
   0xa   : > { %v594_v37 = vld [vmem:[%s954_s4] sm:$0xff] (!%p237_p2) }
   0xb   : > { %v602_v45 = vld [vmem:[%s955_s5] sm:$0xf] (!%p237_p2) }
   0xd   : > { %s959_s25 = smov (!%p266_p3, %s714_s25), 1 }
   0xe   : > { %s719_s26 = sshll.u32 %s959_s25, 2 }
   0xf   : > { %s269_s29 = scalar_lea.vmem %s950_s0, %s719_s26 }
  0x10   : > { %v275_v1 = vld [vmem:[%s269_s29] sm:$0xf] }
  0x11   : > { %v276_v2 = vpack.c.bf16 %v275_v1, %v275_v1 }
  0x13   : > { %281 = vrot.lane.b32.xlu0 %v276_v2, %s816_s9  ;;  %v335_v4 = vsel %vm287_vm1, %v276_v2, 0 }
  0x14   : > { %755 = vmatpush3.bf16.msra.mxu1 %v335_v4 }
  0x15   : > { %766 = vmatprep.subr.bf16.mxu1 %v814_v0 }
  0x17   : > { %379 = vrot.lane.b32.xlu0 %v276_v2, %s818_s12  ;;  %757 = vmatmul.mubr.msk.bf16.vlgmr.msra.gmra.mrb[0].mxu1 %vm283_vm2, %v277_v6 }
  0x18   : > { %768 = vmatprep.mubr.msk.bf16.mxu1 %vm815_vm0, %v814_v0 }
  0x85   : > { %v282_v7 = vpop.permute.xlu0 %281 }
  0x86   : > { %v289_v8 = vsel %vm287_vm1, %v282_v7, 0 }
  0x87   : > { %749 = vmatpush3.bf16.msra.mxu0 %v289_v8 }
  0x88   : > { %760 = vmatprep.subr.bf16.mxu0 %v814_v0  ;;  %v432_v25 = vpop.permute.xlu1 %431 }
  0x89   : > { %v380_v10 = vpop.permute.xlu0 %379 }
  0x8a   : > { %751 = vmatmul.mubr.msk.bf16.vlgmr.msra.gmra.mrb[0].mxu0 %vm283_vm2, %v721_v9  ;;  %v385_v11 = vsel %vm287_vm1, %v380_v10, 0 }
  0x8b   : > { %761 = vmatpush3.bf16.msra.mxu0 %v385_v11  ;;  %762 = vmatprep.mubr.msk.bf16.mxu0 %vm815_vm0, %v814_v0 }
  0x8c   : > { %772 = vmatprep.subr.bf16.mxu0 %v814_v0 }
  0x92   : > { %763 = vmatmul.mubr.msk.bf16.vlgmr.msra.gmra.mrb[4].mxu0 %vm283_vm2, %v724_v12 }
  0x93   : > { %774 = vmatprep.mubr.msk.bf16.mxu0 %vm815_vm0, %v814_v0 }
  0xea   : > { %v371_v13 = vpop.f32.mrb[0].mxu1 }
  0xeb   : > { %v758_v14 = vpop.f32.mrb[1].mxu1 }
  0xec   : > { %v374_v15 = vpop.f32.mrb[2].mxu1 }
  0xed   : > { %v759_v16 = vpop.f32.mrb[3].mxu1 }
 0x15d   : > { %v325_v17 = vpop.f32.mrb[0].mxu0 }
 0x15e   : > { %v372_v18 = vadd.f32 %v371_v13, %v325_v17  ;;  %v752_v19 = vpop.f32.mrb[1].mxu0 }
 0x15f   : > { %v328_v20 = vpop.f32.mrb[2].mxu0 }
 0x160   : > { %v753_v21 = vpop.f32.mrb[3].mxu0 }
 0x165   : > { %v421_v23 = vpop.f32.mrb[4].mxu0 }
 0x166   : > { %v427_v26 = vadd.f32 %v421_v23, %v372_v18  ;;  %v764_v27 = vpop.f32.mrb[5].mxu0 }
 0x167   : > { %v424_v28 = vpop.f32.mrb[6].mxu0 }
 0x168   : > { %v434_v29 = vadd.f32 %v432_v25, %v427_v26  ;;  %v765_v30 = vpop.f32.mrb[7].mxu0 }
 0x16a   : > { %v435_v31 = vmax.f32 %v434_v29, 0.0 }
 0x16c   : > { %v441_v32 = vsel %vm438_vm3, %v435_v31, 0.0 }
 0x16d   : > { %v442_v33 = vpack.c.bf16 %v441_v32, %v441_v32 }
 0x16f   : > { %545 = vrot.lane.b32.xlu0 %v442_v33, %s818_s12  ;;  %447 = vrot.lane.b32.xlu1 %v442_v33, %s816_s9  ;;  %v501_v34 = vsel %vm453_vm4, %v442_v33, 0  ;;  %s720_s9 = sshll.u32 %s959_s25, 3 }
 0x170   : > { %773 = vmatpush3.bf16.msra.mxu0 %v501_v34  ;;  %s273_s12 = scalar_lea.vmem %s957_s7, %s720_s9 }
 0x171   : > { %784 = vmatprep.subr.bf16.mxu0 %v814_v0 }
 0x173   : > { %609 = vrot.lane.b32.xlu1 %v276_v2, %s819_s19  ;;  %775 = vmatmul.mubr.msk.bf16.vlgmr.msra.gmra.mrb[8].mxu0 %vm449_vm5, %v443_v35 }
 0x174   : > { %786 = vmatprep.mubr.msk.bf16.mxu0 %vm815_vm0, %v814_v0  ;;  %597 = vperm.xlu0 %805, %v594_v37  }
 0x177   : > { %606 = vperm.xlu1 %804, %v603_v36  }
 0x1e1   : > { %v448_v38 = vpop.permute.xlu1 %447  ;;  %v546_v40 = vpop.permute.xlu0 %545 }
 0x1e2   : > { %v455_v39 = vsel %vm453_vm4, %v448_v38, 0  ;;  %v551_v43 = vsel %vm453_vm4, %v546_v40, 0 }
 0x1e3   : > { %767 = vmatpush3.bf16.msra.mxu1 %v455_v39 }
 0x1e4   : > { %778 = vmatprep.subr.bf16.mxu1 %v814_v0 }
 0x1e5   : > { %v610_v42 = vpop.permute.xlu1 %609 }
 0x1e6   : > { %v615_v44 = vsel %vm287_vm1, %v610_v42, 0  ;;  %769 = vmatmul.mubr.msk.bf16.vlgmr.msra.gmra.mrb[4].mxu1 %vm449_vm5, %v726_v41 }
 0x1e7   : > { %779 = vmatpush3.bf16.msra.mxu1 %v551_v43  ;;  %785 = vmatpush3.bf16.msra.mxu0 %v615_v44 }
 0x1e8   : > { %780 = vmatprep.mubr.msk.bf16.mxu1 %vm815_vm0, %v814_v0 }
 0x1ea   : > { %787 = vmatmul.mubr.msk.bf16.vlgmr.msra.gmra.mrb[12].mxu0 %vm283_vm2, %v602_v45 }
 0x1ee   : > { %781 = vmatmul.mubr.msk.bf16.vlgmr.msra.gmra.mrb[8].mxu1 %vm449_vm5, %v729_v46 }
 0x1f3   : > { %v598_v61 = vpop.permute.xlu0 %597 }
 0x1f6   : > { %v607_v3 = vpop.permute.xlu1 %606 }
 0x246   : > { %v537_v47 = vpop.f32.mrb[8].mxu0 }
 0x247   : > { %v776_v48 = vpop.f32.mrb[9].mxu0 }
 0x248   : > { %v540_v49 = vpop.f32.mrb[10].mxu0 }
 0x249   : > { %v777_v50 = vpop.f32.mrb[11].mxu0 }
 0x2b9   : > { %v491_v51 = vpop.f32.mrb[4].mxu1 }
 0x2ba   : > { %v538_v52 = vadd.f32 %v537_v47, %v491_v51  ;;  %v770_v53 = vpop.f32.mrb[5].mxu1 }
 0x2bb   : > { %v494_v54 = vpop.f32.mrb[6].mxu1 }
 0x2bc   : > { %v771_v55 = vpop.f32.mrb[7].mxu1 }
 0x2bd   : > { %v651_v56 = vpop.f32.mrb[12].mxu0 }
 0x2be   : > { %v788_v57 = vpop.f32.mrb[13].mxu0  ;;  %v652_v4 = vadd.f32 %v651_v56, %v607_v3 }
 0x2bf   : > { %v654_v58 = vpop.f32.mrb[14].mxu0 }
 0x2c0   : > { %v789_v59 = vpop.f32.mrb[15].mxu0 }
 0x2c1   : > { %v587_v60 = vpop.f32.mrb[8].mxu1 }
 0x2c2   : > { %v593_v62 = vadd.f32 %v587_v60, %v538_v52  ;;  %v782_v63 = vpop.f32.mrb[9].mxu1 }
 0x2c3   : > { %v590_v0 = vpop.f32.mrb[10].mxu1 }
 0x2c4   : > { %v600_v1 = vadd.f32 %v598_v61, %v593_v62  ;;  %v783_v2 = vpop.f32.mrb[11].mxu1 }
 0x2c6   : > { %v601_v5 = vmax.f32 %v600_v1, 0.0 }
 0x2c8   : > { %v657_v6 = vadd.f32 %v652_v4, %v601_v5 }
 0x2ca   : > { %v658_v7 = vmax.f32 %v657_v6, 0.0 }
 0x2cc   : > { %660 = vst.msk [vmem:[%s273_s12] sm:$0xff] %vm659_vm6, %v658_v7 }
 0x2cd PF: > { %s17_s24 = sadd.s32 1, %s812_s24  }
 0x2ce   : > { %p14_p4 = scmp.ge.s32.totalorder %s17_s24, 4  }
 0x2d0   :  { %16 = sbr.rel (!%p14_p4) target bundleno = 1 (0x1), region = 82 }

// kernel: tcn_encoder_forward.3
= control target key start
LH: loop header
LB: loop body
LE: loop exit
PB: predicated region body
PF: predicated region fallthrough
CT: control target
= control target key end

     0   :  { %12 = vsyncpa [#allocation3], 0  ;;  %s1085_s0 = inlined_call_operand.vmem [shape: f32[2,8,24], index: 0, kind: input, shape index: {}]   ;;  %s1086_s1 = inlined_call_operand.vmem [shape: bf16[3,8,8], index: 1, kind: input, shape index: {}]   ;;  %s1087_s2 = inlined_call_operand.vmem [shape: f32[8,1], index: 2, kind: input, shape index: {}]   ;;  %s1088_s3 = inlined_call_operand.vmem [shape: bf16[3,8,8], index: 3, kind: input, shape index: {}]   ;;  %s1089_s4 = inlined_call_operand.vmem [shape: f32[8,1], index: 4, kind: input, shape index: {}]   ;;  %s1090_s5 = inlined_call_operand.vmem [shape: f32[8,32], index: 5, kind: input, shape index: {}]   ;;  %s1091_s6 = inlined_call_operand.vmem [shape: f32[1,32], index: 6, kind: input, shape index: {}]   ;;  %s1092_s7 = inlined_call_operand.hbm [shape: f32[2,1,32], index: 7, kind: output, shape index: {}]  }
   0x1   :  { %14 = vsyncpa [#allocation3 + $0x1], 0  ;;  %s916_s24 = smov 0   ;;  %s918_s25 = smov 0  }
   0x2   :  { %s920_s26 = smov 0   ;;  %s922_s27 = smov 0  }
   0x3 LB: > { %s937_s28 = sadd.s32 4294967295, %s867_s27   ;;  %s692_s29 = sadd.s32 4294967294, %s867_s27   ;;  %s867_s27 = sphi %s922_s27, %s1098_s27   ;;  %s863_s26 = sphi %s920_s26, %s1097_s26   ;;  %s859_s25 = sphi %s918_s25, %s1096_s25   ;;  %s855_s24 = sphi %s916_s24, %s1095_s24  }
   0x4   : > { %s941_s30 = sadd.s32 1, %s867_s27   ;;  %s179_s8 = sadd.s32 1, %s863_s26 }
   0x5   : > { %s176_s9 = ssub.s32 %s867_s27, %s941_s30  ;;  %p189_p0 = scmp.ne.s32.totalorder %s863_s26, %s859_s25 }
   0x6   : > { %p177_p1 = scmp.eq.s32.totalorder %s176_s9, 0  ;;  %p190_p2 = scmp.eq.s32.totalorder %s937_s28, 1 }
   0x7   : > { %p195_p3 = scmp.ne.s32.totalorder %s859_s25, %s855_s24  ;;  %p196_p4 = scmp.eq.s32.totalorder %s692_s29, 1 }
   0x8   : > { %s952_s10 = scalar_select %p177_p1, %s863_s26, %s179_s8  }
   0x9   : > { %p954_p5 = por %p190_p2, %p189_p0  ;;  %p958_p6 = por %p196_p4, %p195_p3 }
   0xa   : > { %p695_p7 = scmp.ge.s32.totalorder %s867_s27, 1  ;;  %p239_p8 = scmp.lt.s32.totalorder %s867_s27, 3 }
   0xc   : > { %p240_p9 = pnand %p695_p7, %p239_p8 }
   0xd   : > { %p269_p10 = scmp.lt.s32.totalorder (!%p240_p9), %s937_s28, 1  ;;  %v869_v0 = vmov (!%p240_p9), 0.0   ;;  %vm870_vm0 = vmmov (!%p240_p9), 0   ;;  %vm286_vm1 = vcmask (!%p240_p9), 1043456   ;;  %v427_v3 = vld [vmem:[%s1087_s2] sm:$0xff] (!%p240_p9)  ;;  %s871_s20 = smov (!%p240_p9), 126   ;;  %v435_v22 = vlaneseq (!%p240_p9) }
   0xe   : > { %243 = sbr.rel (%p240_p9) target bundleno = 901 (0x385), region = 48  ;;  %722 = vmatprep.subr.bf16.mxu0 (!%p240_p9), %v869_v0  ;;  %728 = vmatprep.subr.bf16.mxu1 (!%p240_p9), %v869_v0  ;;  %v872_v5 = vmov (!%p240_p9), 0   ;;  %vm282_vm2 = vcmask (!%p240_p9), 64512   ;;  %v276_v6 = vld [vmem:[%s1086_s1] sm:$0xf] (!%p240_p9)  ;;  %s873_s23 = smov (!%p240_p9), 124  }
   0xf   : > { %724 = vmatprep.mubr.msk.bf16.mxu0 (!%p240_p9), %vm870_vm0, %v869_v0  ;;  %730 = vmatprep.mubr.msk.bf16.mxu1 (!%p240_p9), %vm870_vm0, %v869_v0  ;;  %v697_v9 = vld [vmem:[%s1086_s1 + $0x4] sm:$0xf] (!%p240_p9)  ;;  %v700_v12 = vld [vmem:[%s1086_s1 + $0x8] sm:$0xf] (!%p240_p9)  ;;  %v436_v24 = vand.u32 (!%p240_p9), 127, %v435_v22  ;;  %s874_s18 = smov (!%p240_p9), 120  }
  0x10   : > { %803 = vset.pattern.permute.xlu1 (!%p240_p9), %v872_v5  ;;  %804 = vset.pattern.permute.xlu0 (!%p240_p9), %v872_v5  ;;  %v591_v35 = vld [vmem:[%s1089_s4] sm:$0xff] (!%p240_p9)  ;;  %v705_v42 = vld [vmem:[%s1088_s3 + $0x8] sm:$0xf] (!%p240_p9)  ;;  %vm605_vm4 = vcmask (!%p240_p9), 130048   ;;  %vm612_vm5 = vcmask (!%p240_p9), 261120   ;;  %s267_s8 = sand.u32 (!%p240_p9), 1, %s859_s25  }
  0x11   : > { %430 = vperm.xlu1 (!%p240_p9), %803, %v427_v3   ;;  %vm437_vm3 = vcmp.ge.s32.totalorder (!%p240_p9), %v436_v24, 4  ;;  %v442_v36 = vld [vmem:[%s1088_s3] sm:$0xf] (!%p240_p9)  ;;  %v702_v40 = vld [vmem:[%s1088_s3 + $0x4] sm:$0xf] (!%p240_p9)  ;;  %s268_s15 = scalar_lea.vmem (!%p240_p9), [#allocation2], %s267_s8 }
  0x12   : > { %s637_s16 = sshll.u32 (!%p240_p9), %s268_s15, 4  ;;  %vm622_vm6 = vcmask (!%p240_p9), 253952   ;;  %s1045_s16 = int_to_ptr.vmem [resolvable:$true] %s637_s16 }
  0x13   : > { %s805_s21 = scalar_lea.vmem (!%p240_p9), %s1045_s16, 16 }
  0x14   : > { %p806_p11 = scmp.ne.s32.totalorder (!%p240_p9), %s1045_s16, %s805_s21 }
  0x15   : > { %s270_s13 = scalar_select %p269_p10, %s937_s28, 1 }
  0x16   : > { %p807_p12 = pnand %p806_p11, %p954_p5 }
  0x17   : > { %s696_s14 = sshll.u32 %s270_s13, 3 }
  0x18   : > { %s272_s17 = scalar_lea.vmem %s1085_s0, %s696_s14  ;;  %s707_s14 = sshll.u32 %s937_s28, 4 }
  0x19   : > { %v975_v1 = vld [vmem:[%s272_s17] sm:$0xff]  ;;  %s1043_s19 = scalar_lea.hbm %s1092_s7, %s707_s14  ;;  %p808_p13 = pneg %p807_p12 }
  0x1a   : > { %v275_v2 = vpack.c.bf16 %v975_v1, %v975_v1  ;;  %s875_s28 = smov [#allocation2]  }
  0x1b   : > { %s809_s22 = sshll.u32 %s875_s28, 4  ;;  %s810_s22 = int_to_ptr.vmem [resolvable:$false] %s809_s22 }
  0x1c   : > { %280 = vrot.lane.b32.xlu0 %v275_v2, %s871_s20  ;;  %v334_v4 = vsel %vm286_vm1, %v275_v2, 0  ;;  %p812_p0 = scmp.lt.s32.totalorder %s1045_s16, %s810_s22 }
  0x1d   : > { %729 = vmatpush3.bf16.msra.mxu1 %v334_v4 }
  0x1e   : > { %740 = vmatprep.subr.bf16.mxu1 %v869_v0 }
  0x20   : > { %378 = vrot.lane.b32.xlu0 %v275_v2, %s873_s23  ;;  %731 = vmatmul.mubr.msk.bf16.vlgmr.msra.gmra.mrb[0].mxu1 %vm282_vm2, %v276_v6 }
  0x21   : > { %742 = vmatprep.mubr.msk.bf16.mxu1 %vm870_vm0, %v869_v0 }
  0x8e   : > { %v281_v7 = vpop.permute.xlu0 %280 }
  0x8f   : > { %v288_v8 = vsel %vm286_vm1, %v281_v7, 0 }
  0x90   : > { %723 = vmatpush3.bf16.msra.mxu0 %v288_v8  ;;  %v431_v25 = vpop.permute.xlu1 %430 }
  0x91   : > { %734 = vmatprep.subr.bf16.mxu0 %v869_v0 }
  0x92   : > { %v379_v10 = vpop.permute.xlu0 %378 }
  0x93   : > { %725 = vmatmul.mubr.msk.bf16.vlgmr.msra.gmra.mrb[0].mxu0 %vm282_vm2, %v697_v9  ;;  %v384_v11 = vsel %vm286_vm1, %v379_v10, 0  ;;  %v620_v10 = vld [vmem:[%s1091_s6] sm:$0x1] }
  0x94   : > { %735 = vmatpush3.bf16.msra.mxu0 %v384_v11  ;;  %736 = vmatprep.mubr.msk.bf16.mxu0 %vm870_vm0, %v869_v0 }
  0x95   : > { %746 = vmatprep.subr.bf16.mxu0 %v869_v0 }
  0x9b   : > { %737 = vmatmul.mubr.msk.bf16.vlgmr.msra.gmra.mrb[4].mxu0 %vm282_vm2, %v700_v12 }
  0x9c   : > { %748 = vmatprep.mubr.msk.bf16.mxu0 %vm870_vm0, %v869_v0 }
  0xf3   : > { %v370_v13 = vpop.f32.mrb[0].mxu1 }
  0xf4   : > { %v732_v14 = vpop.f32.mrb[1].mxu1 }
  0xf5   : > { %v373_v15 = vpop.f32.mrb[2].mxu1 }
  0xf6   : > { %v733_v16 = vpop.f32.mrb[3].mxu1 }
 0x166   : > { %v324_v17 = vpop.f32.mrb[0].mxu0 }
 0x167   : > { %v371_v18 = vadd.f32 %v370_v13, %v324_v17  ;;  %v726_v19 = vpop.f32.mrb[1].mxu0 }
 0x168   : > { %v327_v20 = vpop.f32.mrb[2].mxu0 }
 0x169   : > { %v727_v21 = vpop.f32.mrb[3].mxu0 }
 0x16e   : > { %v420_v23 = vpop.f32.mrb[4].mxu0 }
 0x16f   : > { %v426_v26 = vadd.f32 %v420_v23, %v371_v18  ;;  %v738_v27 = vpop.f32.mrb[5].mxu0 }
 0x170   : > { %v423_v28 = vpop.f32.mrb[6].mxu0 }
 0x171   : > { %v433_v29 = vadd.f32 %v431_v25, %v426_v26  ;;  %v739_v30 = vpop.f32.mrb[7].mxu0 }
 0x173   : > { %v434_v31 = vmax.f32 %v433_v29, 0.0 }
 0x175   : > { %v440_v32 = vsel %vm437_vm3, %v434_v31, 0.0 }
 0x176   : > { %v441_v33 = vpack.c.bf16 %v440_v32, %v440_v32 }
 0x178   : > { %542 = vrot.lane.b32.xlu0 %v441_v33, %s873_s23  ;;  %446 = vrot.lane.b32.xlu1 %v441_v33, %s871_s20  ;;  %v498_v34 = vsel %vm286_vm1, %v441_v33, 0  ;;  %s625_s20 = scalar_lea.sflag [#allocation3], %s267_s8  ;;  %s811_s23 = scalar_lea.vmem %s810_s22, 32 }
 0x179   : > { %747 = vmatpush3.bf16.msra.mxu0 %v498_v34  ;;  %p813_p1 = scmp.lt.s32.totalorder %s811_s23, %s805_s21 }
 0x17b   : > { %p814_p2 = por %p813_p1, %p812_p0 }
 0x17c   : > { %594 = vperm.xlu1 %803, %v591_v35   ;;  %749 = vmatmul.mubr.msk.bf16.vlgmr.msra.gmra.mrb[8].mxu0 %vm282_vm2, %v442_v36 }
 0x17d   : > { %600 = vrot.lane.b32.xlu0 %v975_v1, %s874_s18  ;;  %p815_p3 = pnand %p814_p2, %p808_p13 }
 0x1ea   : > { %v447_v37 = vpop.permute.xlu1 %446  ;;  %v543_v39 = vpop.permute.xlu0 %542 }
 0x1eb   : > { %v452_v38 = vsel %vm286_vm1, %v447_v37, 0  ;;  %v548_v41 = vsel %vm286_vm1, %v543_v39, 0 }
 0x1ec   : > { %741 = vmatpush3.bf16.msra.mxu1 %v452_v38 }
 0x1ed   : > { %752 = vmatprep.subr.bf16.mxu1 %v869_v0 }
 0x1ef   : > { %743 = vmatmul.mubr.msk.bf16.vlgmr.msra.gmra.mrb[4].mxu1 %vm282_vm2, %v702_v40  ;;  %v601_v59 = vpop.permute.xlu0 %600 }
 0x1f0   : > { %753 = vmatpush3.bf16.msra.mxu1 %v548_v41  ;;  %754 = vmatprep.mubr.msk.bf16.mxu1 %vm870_vm0, %v869_v0  ;;  %v610_v0 = vld [vmem:[%s1090_s5] sm:$0xff] }
 0x1f7   : > { %755 = vmatmul.mubr.msk.bf16.vlgmr.msra.gmra.mrb[8].mxu1 %vm282_vm2, %v705_v42 }
 0x1fb   : > { %v595_v55 = vpop.permute.xlu1 %594 }
 0x24f   : > { %v534_v43 = vpop.f32.mrb[8].mxu0 }
 0x250   : > { %v750_v44 = vpop.f32.mrb[9].mxu0 }
 0x251   : > { %v537_v45 = vpop.f32.mrb[10].mxu0 }
 0x252   : > { %v751_v46 = vpop.f32.mrb[11].mxu0 }
 0x2c2   : > { %v488_v47 = vpop.f32.mrb[4].mxu1 }
 0x2c3   : > { %v744_v48 = vpop.f32.mrb[5].mxu1  ;;  %v535_v49 = vadd.f32 %v534_v43, %v488_v47 }
 0x2c4   : > { %v491_v50 = vpop.f32.mrb[6].mxu1 }
 0x2c5   : > { %v745_v51 = vpop.f32.mrb[7].mxu1 }
 0x2ca   : > { %v584_v52 = vpop.f32.mrb[8].mxu1 }
 0x2cb   : > { %v590_v53 = vadd.f32 %v584_v52, %v535_v49  ;;  %v756_v54 = vpop.f32.mrb[9].mxu1 }
 0x2cc   : > { %v587_v56 = vpop.f32.mrb[10].mxu1 }
 0x2cd   : > { %v597_v57 = vadd.f32 %v595_v55, %v590_v53  ;;  %v757_v58 = vpop.f32.mrb[11].mxu1 }
 0x2cf   : > { %v598_v60 = vmax.f32 %v597_v57, 0.0 }
 0x2d1   : > { %v603_v61 = vadd.f32 %v601_v59, %v598_v60 }
 0x2d3   : > { %v604_v62 = vmax.f32 %v603_v61, 0.0 }
 0x2d5   : > { %v606_v63 = vsel %vm605_vm4, %v604_v62, 0.0 }
 0x2d6   : > { %607 = vadd.xlane.f32.xlu1 %v606_v63 }
 0x363   : > { %v608_v1 = vpop.xlane.xlu1 %607 }
 0x364   : > { %v609_v2 = vmul.f32 0.0625, %v608_v1 }
 0x366   : > { %v611_v3 = vmul.f32 %v610_v0, %v609_v2 }
 0x368   : > { %v613_v4 = vsel %vm612_vm5, %v611_v3, 0.0 }
 0x369   : > { %v614_v5 = vrot.slane %v613_v4, 4 }
 0x36b   : > { %v615_v6 = vadd.f32 %v614_v5, %v613_v4 }
 0x36d   : > { %v616_v7 = vrot.slane %v615_v6, 2 }
 0x36f   : > { %v617_v8 = vadd.f32 %v616_v7, %v615_v6 }
 0x371   : > { %v618_v9 = vrot.slane %v617_v8, 1 }
 0x373   : > { %v619_v11 = vadd.f32 %v618_v9, %v617_v8 }
 0x375   : > { %v621_v12 = vadd.f32 %v620_v10, %v619_v11 }
 0x377   : > { %623 = vst.msk [vmem:[%s268_s15] sm:$0x1] %vm622_vm6, %v621_v12 }
 0x378   : > { %818 = shalt.err (!%p815_p3)
}
 0x379   : > { %s819_s29 = scalar_lea.hbm %s1043_s19, 16  ;;  %s823_s13 = scalar_lea.hbm %s1092_s7, 32 }
 0x37a   : > { %p820_p4 = scmp.ne.s32.totalorder %s1043_s19, %s819_s29  ;;  %p824_p9 = scmp.lt.u32.totalorder %s1043_s19, %s1092_s7 }
 0x37b   : > { %p825_p10 = scmp.lt.u32.totalorder %s823_s13, %s819_s29  ;;  %p827_p12 = scmp.lt.u32.totalorder %s819_s29, %s1043_s19 }
 0x37c   : > { %p821_p7 = pnand %p820_p4, %p954_p5 }
 0x37d   : > { %p826_p11 = por %p825_p10, %p824_p9 }
 0x37e   : > { %p822_p8 = pneg %p821_p7 }
 0x37f   : > { %p828_p13 = por %p827_p12, %p826_p11 }
 0x381   : > { %p829_p0 = pnand %p828_p13, %p822_p8 }
 0x383   : > { %832 = shalt.err (!%p829_p0)
}
 0x384   : > { %758 = dma.vmem_to_hbm [thread:$0]  (%p954_p5), %s1045_s16, 16, %s1043_s19, %s625_s20  }
 0x385 PF: > { %p764_p1 = scmp.ge.s32.totalorder %s867_s27, 2  ;;  %s649_s17 = sand.u32 1, %s855_s24  }
 0x386   : > { %s650_s18 = scalar_lea.sflag [#allocation3], %s649_s17 }
 0x387   : > { %p761_p2 = pnand %p764_p1, %p958_p6 }
 0x389   : > { %850 = dma.done.wait (!%p761_p2), %s650_s18, 16  }
 0x38a   : > { %852 = vsyncadd (!%p761_p2), %s650_s18, 4294967280  ;;  %p17_p3 = scmp.ge.s32.totalorder %s941_s30, 4   ;;  %s1095_s24 = smov %s859_s25 }
 0x38b   : > { %s1096_s25 = smov %s863_s26  ;;  %s1097_s26 = smov %s952_s10 }
 0x38c   : > { %s1098_s27 = smov %s941_s30  ;;  %19 = sbr.rel (!%p17_p3) target bundleno = 3 (0x3), region = 87 }
 0x393   :  { %654 = vsyncpa [#allocation3], 1 }
 0x394   :  { %656 = vsyncpa [#allocation3 + $0x1], 1 }

</bundles_post_ra>
